<compile_context>
chip_gen: v7x
topology: tpu7x:2x2x1
jax: 0.10.0
libtpu: 0.0.40
codegen_flags: <defaults>
</compile_context>

<pallas_src>
import jax
import jax.numpy as jnp
from jax import lax
from jax.experimental import pallas as pl
from jax.experimental.pallas import tpu as pltpu

# ---------------- small config consistent with the module ----------------
BEV_H = 16
BEV_W = 16
EMBED = 32                          # embed_dims (256 in the original)
NUM_FEATS = EMBED // 2              # LearnedPositionalEncoding num_feats
NUM_CAMS = 4
NUM_LEVELS = 2                      # num_feature_levels (4 in the original)
FEAT_SHAPES = [(16, 16), (8, 16)]   # per-level (h, w): hw = 256, 128
BS = 2
GRID_LENGTH = (2.0 / 48.0, 2.0 / 48.0)
LN_EPS = 1e-5

# Tile-row defaults.  1024-2048 rows reach ~85% of HBM roofline; at bs=1, C=256 the
# live double-buffered VMEM stays well under v7x's ~48 MiB budget (64 MiB physical)
# as well as v5e/v6e's 128 MiB.
_QUERY_TILE_ROWS = 1024
_FEAT_TILE_ROWS = 1024


def _mosaic_params(dimension_semantics):
    """CompilerParams with a generation-aware VMEM budget (~75% of physical:
    ~96 MiB on v5e/v6e's 128 MiB, ~48 MiB on v7x's 64 MiB)."""
    kwargs = dict(dimension_semantics=dimension_semantics)
    try:
        cap = getattr(pltpu.get_tpu_info(), "vmem_capacity_bytes", None)
    except Exception:
        cap = None
    if cap:
        kwargs["vmem_limit_bytes"] = int(min(96 * 2**20, 0.75 * cap))
    return pltpu.CompilerParams(**kwargs)


# ------------------------- Pallas kernel 1: query path --------------------
def _query_kernel(emb_ref, cb_ref, w1_ref, b1_ref, w2_ref, b2_ref, g_ref, beta_ref,
                  q_out_ref):
    """One hw tile: bev_queries = bev_embedding_tile + canbus_MLP_LN(can_bus).

    The can-bus MLP (+LayerNorm) is recomputed per tile (cheap, fully hidden under
    the HBM stores) so there is NO cross-tile scratch carry and the grid axis is
    'parallel' (v7x megacore splits the hw tiles)."""
    cb = cb_ref[...]                                              # (bs, 5)
    # Linear(5, C/2): K=5 contraction unrolled as VPU FMAs (far too small for the MXU).
    h = b1_ref[...] + cb[:, 0:1] * w1_ref[pl.ds(0, 1), :]
    for k in range(1, 5):
        h = h + cb[:, k:k + 1] * w1_ref[pl.ds(k, 1), :]
    h = jnp.maximum(h, 0.0)
    # Linear(C/2, C) + ReLU + LayerNorm (biased variance, matches nn.LayerNorm).
    y = jnp.dot(h, w2_ref[...], preferred_element_type=jnp.float32) + b2_ref[...]
    y = jnp.maximum(y, 0.0)
    mu = jnp.mean(y, axis=-1, keepdims=True)
    var = jnp.mean((y - mu) ** 2, axis=-1, keepdims=True)
    cb_feat = (y - mu) * lax.rsqrt(var + LN_EPS) * g_ref[...] + beta_ref[...]  # (bs, C)

    emb = emb_ref[...]                                            # (q_tile, C)
    q_out_ref[...] = (emb[None, :, :] + cb_feat[:, None, :]).astype(q_out_ref.dtype)


def build_queries(bev_embedding, can_bus, w1, b1, w2, b2, g, beta,
                  q_tile=None, out_dtype=jnp.float32):
    hw, c = bev_embedding.shape
    bs = can_bus.shape[0]
    if q_tile is None:
        # Never the full BEV (40000 rows at 200x200 would blow VMEM); 1024-2048 rows
        # already give 85-86% of HBM roofline at ~0.35 us/step overhead.
        q_tile = min(hw, _QUERY_TILE_ROWS)
    const = lambda i: (0, 0)
    return pl.pallas_call(
        _query_kernel,
        out_shape=jax.ShapeDtypeStruct((bs, hw, c), out_dtype),
        grid_spec=pltpu.PrefetchScalarGridSpec(
            num_scalar_prefetch=0,
            grid=(pl.cdiv(hw, q_tile),),
            in_specs=[
                pl.BlockSpec((q_tile, c), lambda i: (i, 0)),   # bev embedding tile
                pl.BlockSpec((bs, 5), const),        # can_bus (const index -> DMA'd once)
                pl.BlockSpec((5, c // 2), const),
                pl.BlockSpec((1, c // 2), const),
                pl.BlockSpec((c // 2, c), const),
                pl.BlockSpec((1, c), const),
                pl.BlockSpec((1, c), const),
                pl.BlockSpec((1, c), const),
            ],
            # NOTE: last dim C=32 at toy scale lowers to masked vst; production C=256
            # (multiple of 128) keeps the stores lane-dense.
            out_specs=pl.BlockSpec((bs, q_tile, c), lambda i: (0, i, 0)),
        ),
        compiler_params=_mosaic_params(("parallel",)),
    )(bev_embedding, can_bus, w1, b1[None], w2, b2[None], g[None], beta[None])


# ------------------------- Pallas kernel 2: feature path ------------------
def _feat_flatten_kernel(tile_lvl_ref, in_blk_ref, *refs):
    """One grid step = (camera, hw tile).  The scalar-prefetched tile table tells
    which level owns this hw tile; that level's (bs,1,C,hw_t) block is folded to
    (bs*C, hw_t) (layout-preserving, C % 8 == 0), XLU-transposed to (hw_t, bs*C),
    the pre-tiled cam+level embedding is added and the slab is stored straight into
    the final (cam, sum_hw, bs*C) layout."""
    lvl_refs = refs[:-2]
    add_ref = refs[-2]        # (1, num_levels, bs*C) block for this camera
    out_ref = refs[-1]        # (1, hw_t,       bs*C) block for this (cam, tile)
    active = tile_lvl_ref[pl.program_id(1)]
    for l, lref in enumerate(lvl_refs):
        @pl.when(active == l)
        def _(lref=lref, l=l):
            bs_l, _, c_l, hw_t = lref.shape
            f2 = lref[...].reshape(bs_l * c_l, hw_t)       # no-copy fold (C % 8 == 0)
            t = jnp.transpose(f2)                          # (hw_t, bs*C) on the XLU;
            # temp is tile-sized only (no full-camera transpose buffer anymore).
            out_ref[...] = (t + add_ref[0, pl.ds(l, 1), :]).astype(out_ref.dtype)[None]


def flatten_features(mlvl_feats, cams_embeds, level_embeds, hw_tile=None,
                     out_dtype=jnp.float32):
    bs, num_cams, c = mlvl_feats[0].shape[:3]
    num_levels = len(mlvl_feats)
    hw_list = [f.shape[3] * f.shape[4] for f in mlvl_feats]
    sum_hw = sum(hw_list)
    if hw_tile is None:
        hw_tile = min(_FEAT_TILE_ROWS, min(hw_list))
    # TODO(synk): at production BEVFormer level sizes (e.g. 23200/5800/1450/375) pad
    # each level's hw (and hence its start offset in the sum_hw slab) to a multiple
    # of hw_tile (ideally 128) before this call; unpadded sizes break the block-index
    # mapping below and would produce sublane-misaligned partial stores.
    assert all(hwl % hw_tile == 0 for hwl in hw_list), \
        "level hw sizes must be multiples of hw_tile (pad levels at production)"
    assert hw_tile % 128 == 0 or all(hwl == hw_tile for hwl in hw_list), \
        "hw_tile must be a multiple of 128 unless it equals every level's full extent"

    # (bs, cam, C, h, w) -> (bs, cam, C, h*w): free reshape, no copy.
    feats2 = [f.reshape(bs, num_cams, c, hwl) for f, hwl in zip(mlvl_feats, hw_list)]

    # Static tile table: tile j -> owning level; per-level input block index to present
    # at step j.  Inactive levels repeat their previous block index so the pipeline
    # skips their DMA (block index unchanged between consecutive steps).
    n_tiles_lvl = [hwl // hw_tile for hwl in hw_list]
    n_tiles = sum(n_tiles_lvl)
    tile_lvl = []
    for l, nt in enumerate(n_tiles_lvl):
        tile_lvl += [l] * nt
    in_blk = []
    before = 0
    for l, nt in enumerate(n_tiles_lvl):
        in_blk.append([min(max(j - before, 0), nt - 1) for j in range(n_tiles)])
        before += nt
    tile_lvl = jnp.asarray(tile_lvl, jnp.int32)           # (n_tiles,)
    in_blk = jnp.asarray(in_blk, jnp.int32)               # (num_levels, n_tiles)

    # cams_embeds[cam] + level_embeds[l], tiled bs times along the last dim so it adds
    # directly onto the (hw_t, bs*C) transposed block.
    add = cams_embeds[:, None, :] + level_embeds[None, :, :]        # (cam, lvl, C)
    add_tiled = jnp.tile(add, (1, 1, bs))                           # (cam, lvl, bs*C)

    in_specs = [
        pl.BlockSpec((bs, 1, c, hw_tile),
                     lambda cam, j, tl, ib, l=l: (0, cam, 0, ib[l, j]))
        for l in range(num_levels)]
    # Per-camera constant; pipeline_mode=pl.Buffered(1) could drop its unused second
    # buffer when squeezing VMEM on v7x (negligible here).
    in_specs.append(pl.BlockSpec((1, num_levels, bs * c),
                                 lambda cam, j, tl, ib: (cam, 0, 0)))

    out = pl.pallas_call(
        _feat_flatten_kernel,
        out_shape=jax.ShapeDtypeStruct((num_cams, sum_hw, bs * c), out_dtype),
        grid_spec=pltpu.PrefetchScalarGridSpec(
            num_scalar_prefetch=2,
            grid=(num_cams, n_tiles),
            in_specs=in_specs,
            # NOTE: bs*C=64 at toy scale -> masked vst; keep bs*C a multiple of 128
            # (e.g. C=256) at production for lane-dense stores.
            out_specs=pl.BlockSpec((1, hw_tile, bs * c),
                                   lambda cam, j, tl, ib: (cam, j, 0)),
        ),
        # Each step owns a distinct output block -> both axes embarrassingly parallel,
        # letting v7x's two TensorCores split the (cam, hw_tile) grid.
        compiler_params=_mosaic_params(("parallel", "parallel")),
    )(tile_lvl, in_blk, *feats2, add_tiled)
    # Free bitcast reshape: (cam, sum_hw, bs*C) -> (cam, sum_hw, bs, C) final layout.
    return out.reshape(num_cams, sum_hw, bs, c)


# ------------------------------ glue -------------------------------------
def positional_table(row_embed, col_embed, h, w):
    """LearnedPositionalEncoding emitted directly in the final (h*w, C) layout."""
    x_embed = jnp.broadcast_to(col_embed[None, :w, :], (h, w, NUM_FEATS))
    y_embed = jnp.broadcast_to(row_embed[:h, None, :], (h, w, NUM_FEATS))
    return jnp.concatenate([x_embed, y_embed], axis=-1).reshape(h * w, EMBED)


def compute_shift(can_buses):
    # NOTE: production can_bus has 18 entries with ego_angle at index 16; the synthetic
    # width-5 layout keeps the reference's `each[-2]` indexing convention.
    delta_x = can_buses[:, 0]
    delta_y = can_buses[:, 1]
    ego_angle = can_buses[:, -2]
    tl = jnp.sqrt(delta_x ** 2 + delta_y ** 2)
    ta = jnp.arctan2(delta_y, delta_x) / jnp.pi * 180.0
    bev_angle = ego_angle - ta
    shift_y = tl * jnp.cos(bev_angle / 180.0 * jnp.pi) / GRID_LENGTH[0] / BEV_H
    shift_x = tl * jnp.sin(bev_angle / 180.0 * jnp.pi) / GRID_LENGTH[1] / BEV_W
    return jnp.stack([shift_x, shift_y], axis=-1)                 # (bs, 2)


def get_2d_ref_points(bs, h, w):
    ref_y, ref_x = jnp.meshgrid(jnp.linspace(0.5, h - 0.5, h),
                                jnp.linspace(0.5, w - 0.5, w), indexing="ij")
    ref_y = ref_y.reshape(-1)[None] / h
    ref_x = ref_x.reshape(-1)[None] / w
    ref_2d = jnp.stack([ref_x, ref_y], axis=-1)                   # (1, hw, 2)
    ref_2d = jnp.broadcast_to(ref_2d, (bs, h * w, 2))[:, :, None, :]
    return ref_2d                                                 # (bs, hw, 1, 2)


def encoder_forward(params, mlvl_feats, can_buses, prev_bev=None):
    bs = mlvl_feats[0].shape[0]
    hw = BEV_H * BEV_W

    pos_hw = positional_table(params["pos_row"], params["pos_col"], BEV_H, BEV_W)
    shift = compute_shift(can_buses)

    # Fused kernel 1: can-bus MLP+LN + bev_queries in the final (bs, hw, C) layout.
    bev_queries = build_queries(
        params["bev_embedding"], can_buses,
        params["mlp_w1"], params["mlp_b1"], params["mlp_w2"], params["mlp_b2"],
        params["ln_g"], params["ln_b"])

    # bev_pos is a pure broadcast of the positional table across bs; emit it once as
    # (1, hw, C) and let the consumer broadcast -> no (bs-1)/bs redundant HBM writes.
    bev_pos = pos_hw[None]

    # Fused kernel 2: flatten + cams/level embeds + concat + final permute,
    # tiled over (camera, hw) and written directly in the final layout.
    feat_flatten = flatten_features(mlvl_feats, params["cams_embeds"],
                                    params["level_embeds"])       # (cam, sum_hw, bs, C)

    spatial_shapes = jnp.asarray([(f.shape[3], f.shape[4]) for f in mlvl_feats],
                                 dtype=jnp.int32)
    level_start_index = jnp.concatenate(
        [jnp.zeros((1,), jnp.int32),
         jnp.cumsum(jnp.prod(spatial_shapes, axis=1))[:-1].astype(jnp.int32)])

    ref_2d = get_2d_ref_points(bs, BEV_H, BEV_W)
    shift_ref_2d = ref_2d + shift[:, None, None, :]

    if prev_bev is not None:
        # TODO(synk): rotate_prev_bev (torchvision.rotate) and the prev_bev hybrid
        # stacking branch are not implemented (prev_bev is None in this synthetic run).
        hybrid_ref_2d = jnp.stack([shift_ref_2d, ref_2d], 1).reshape(bs * 2, hw, 1, 2)
    else:
        # Matches the reference module exactly: its else branch stacks [ref_2d, ref_2d].
        hybrid_ref_2d = jnp.stack([ref_2d, ref_2d], 1).reshape(bs * 2, hw, 1, 2)

    # TODO(synk): BEVFormerBlock (temporal self-attn / spatial cross-attn / FFN) source
    # is not provided, so the 3 block applications cannot be reproduced; the prepared
    # query tensor is returned as the output proxy along with all block inputs.
    output = bev_queries
    aux = dict(feat_flatten=feat_flatten, bev_pos=bev_pos,
               spatial_shapes=spatial_shapes, level_start_index=level_start_index,
               hybrid_ref_2d=hybrid_ref_2d,
               reference_points_cam=params["reference_points_cam"],
               bev_mask=params["bev_mask"])
    return output, aux


# ----------------------- pure-XLA reference (validation) -------------------
def _reference_outputs(params, mlvl_feats, can_buses):
    h = jnp.maximum(can_buses @ params["mlp_w1"] + params["mlp_b1"], 0.0)
    y = jnp.maximum(h @ params["mlp_w2"] + params["mlp_b2"], 0.0)
    mu = y.mean(-1, keepdims=True)
    var = ((y - mu) ** 2).mean(-1, keepdims=True)
    cbf = (y - mu) / jnp.sqrt(var + LN_EPS) * params["ln_g"] + params["ln_b"]
    q_ref = params["bev_embedding"][None, :, :] + cbf[:, None, :]

    pos_hw = positional_table(params["pos_row"], params["pos_col"], BEV_H, BEV_W)
    pos_ref = jnp.broadcast_to(pos_hw[None], (can_buses.shape[0],) + pos_hw.shape)

    feats = []
    for l, f in enumerate(mlvl_feats):
        b, nc, c, hh, ww = f.shape
        x = jnp.transpose(f.reshape(b, nc, c, hh * ww), (1, 0, 3, 2))
        x = x + params["cams_embeds"][:, None, None, :]
        x = x + params["level_embeds"][l][None, None, None, :]
        feats.append(x)
    ff_ref = jnp.transpose(jnp.concatenate(feats, axis=2), (0, 2, 1, 3))
    return q_ref, pos_ref, ff_ref


# --------------------------- parameter init --------------------------------
def init_params(key):
    ks = jax.random.split(key, 9)

    def xavier(k, shape):
        bound = jnp.sqrt(6.0 / (shape[0] + shape[1]))
        return jax.random.uniform(k, shape, jnp.float32, -bound, bound)

    return {
        "bev_embedding": jax.random.normal(ks[0], (BEV_H * BEV_W, EMBED), jnp.float32),
        "pos_row": jax.random.normal(ks[1], (BEV_H, NUM_FEATS), jnp.float32),
        "pos_col": jax.random.normal(ks[2], (BEV_W, NUM_FEATS), jnp.float32),
        "mlp_w1": xavier(ks[3], (5, EMBED // 2)),
        "mlp_b1": jnp.zeros((EMBED // 2,), jnp.float32),
        "mlp_w2": xavier(ks[4], (EMBED // 2, EMBED)),
        "mlp_b2": jnp.zeros((EMBED,), jnp.float32),
        "ln_g": jnp.ones((EMBED,), jnp.float32),
        "ln_b": jnp.zeros((EMBED,), jnp.float32),
        "level_embeds": xavier(ks[5], (NUM_LEVELS, EMBED)),
        "cams_embeds": xavier(ks[6], (NUM_CAMS, EMBED)),
        # normally loaded from .npy precomputation; synthesized deterministically here
        "reference_points_cam": jax.random.uniform(
            ks[7], (NUM_CAMS, BS, BEV_H * BEV_W, 4, 2), jnp.float32),
        "bev_mask": (jax.random.uniform(
            ks[8], (NUM_CAMS, BS, BEV_H * BEV_W, 4), jnp.float32) > 0.5).astype(jnp.float32),
    }


if __name__ == "__main__":
    key = jax.random.PRNGKey(0)
    pk, k_f0, k_f1, k_cb = jax.random.split(key, 4)
    params = init_params(pk)
    feat_keys = [k_f0, k_f1]
    mlvl_feats = [jax.random.normal(feat_keys[l], (BS, NUM_CAMS, EMBED, h, w), jnp.float32)
                  for l, (h, w) in enumerate(FEAT_SHAPES)]
    can_buses = jax.random.normal(k_cb, (BS, 5), jnp.float32)

    output, aux = encoder_forward(params, mlvl_feats, can_buses, prev_bev=None)
    jax.block_until_ready(output)
    jax.block_until_ready(aux["feat_flatten"])

    # Validate the Pallas-covered math against a pure-XLA reference.
    q_ref, pos_ref, ff_ref = _reference_outputs(params, mlvl_feats, can_buses)
    assert jnp.allclose(output, q_ref, atol=1e-4, rtol=1e-4)
    assert jnp.allclose(jnp.broadcast_to(aux["bev_pos"], pos_ref.shape), pos_ref,
                        atol=1e-4, rtol=1e-4)
    assert jnp.allclose(aux["feat_flatten"], ff_ref, atol=1e-4, rtol=1e-4)

    # Also exercise the multi-tile query grid (q_tile < hw) to cover the tiled path.
    q_tiled = build_queries(
        params["bev_embedding"], can_buses,
        params["mlp_w1"], params["mlp_b1"], params["mlp_w2"], params["mlp_b2"],
        params["ln_g"], params["ln_b"], q_tile=64)
    jax.block_until_ready(q_tiled)
    assert jnp.allclose(q_tiled, q_ref, atol=1e-4, rtol=1e-4)

    print("KERNEL_OK")
</pallas_src>

<mosaic_0001>
module attributes {stable_mosaic.version = 11 : i64} {
  func.func @_query_kernel(%arg0: i32, %arg1: memref<256x32xf32, #tpu.memory_space<vmem>>, %arg2: memref<2x5xf32, #tpu.memory_space<vmem>>, %arg3: memref<5x16xf32, #tpu.memory_space<vmem>>, %arg4: memref<1x16xf32, #tpu.memory_space<vmem>>, %arg5: memref<16x32xf32, #tpu.memory_space<vmem>>, %arg6: memref<1x32xf32, #tpu.memory_space<vmem>>, %arg7: memref<1x32xf32, #tpu.memory_space<vmem>>, %arg8: memref<1x32xf32, #tpu.memory_space<vmem>>, %arg9: memref<2x256x32xf32, #tpu.memory_space<vmem>>) attributes {dimension_semantics = [#tpu.dimension_semantics<parallel>], iteration_bounds = array<i64: 1>, scalar_prefetch = 0 : i64, scratch_operands = 0 : i64, tpu.core_type = #tpu.core_type<tc>, window_params = [{transform_indices = @transform_0, window_bounds = array<i64: 256, 32>}, {pipeline_mode = #tpu.pipeline_mode<synchronous>, transform_indices = @transform_1, window_bounds = array<i64: 2, 5>}, {pipeline_mode = #tpu.pipeline_mode<synchronous>, transform_indices = @transform_2, window_bounds = array<i64: 5, 16>}, {pipeline_mode = #tpu.pipeline_mode<synchronous>, transform_indices = @transform_3, window_bounds = array<i64: 1, 16>}, {pipeline_mode = #tpu.pipeline_mode<synchronous>, transform_indices = @transform_4, window_bounds = array<i64: 16, 32>}, {pipeline_mode = #tpu.pipeline_mode<synchronous>, transform_indices = @transform_5, window_bounds = array<i64: 1, 32>}, {pipeline_mode = #tpu.pipeline_mode<synchronous>, transform_indices = @transform_6, window_bounds = array<i64: 1, 32>}, {pipeline_mode = #tpu.pipeline_mode<synchronous>, transform_indices = @transform_7, window_bounds = array<i64: 1, 32>}, {transform_indices = @transform_8, window_bounds = array<i64: 2, 256, 32>}]} {
    %c0 = arith.constant 0 : index
    %c0_0 = arith.constant 0 : index
    %0 = vector.load %arg2[%c0, %c0_0] : memref<2x5xf32, #tpu.memory_space<vmem>>, vector<2x5xf32>
    %c0_1 = arith.constant 0 : index
    %c0_2 = arith.constant 0 : index
    %1 = vector.load %arg4[%c0_1, %c0_2] : memref<1x16xf32, #tpu.memory_space<vmem>>, vector<1x16xf32>
    %2 = vector.extract_strided_slice %0 {offsets = [0, 0], sizes = [2, 1], strides = [1, 1]} : vector<2x5xf32> to vector<2x1xf32>
    %c0_3 = arith.constant 0 : index
    %c0_4 = arith.constant 0 : index
    %3 = vector.load %arg3[%c0_3, %c0_4] : memref<5x16xf32, #tpu.memory_space<vmem>>, vector<1x16xf32>
    %4 = vector.broadcast %2 : vector<2x1xf32> to vector<2x16xf32>
    %5 = vector.broadcast %3 : vector<1x16xf32> to vector<2x16xf32>
    %6 = arith.mulf %4, %5 : vector<2x16xf32>
    %7 = vector.broadcast %1 : vector<1x16xf32> to vector<2x16xf32>
    %8 = arith.addf %7, %6 : vector<2x16xf32>
    %9 = vector.extract_strided_slice %0 {offsets = [0, 1], sizes = [2, 1], strides = [1, 1]} : vector<2x5xf32> to vector<2x1xf32>
    %c1 = arith.constant 1 : index
    %c0_5 = arith.constant 0 : index
    %10 = vector.load %arg3[%c1, %c0_5] : memref<5x16xf32, #tpu.memory_space<vmem>>, vector<1x16xf32>
    %11 = vector.broadcast %9 : vector<2x1xf32> to vector<2x16xf32>
    %12 = vector.broadcast %10 : vector<1x16xf32> to vector<2x16xf32>
    %13 = arith.mulf %11, %12 : vector<2x16xf32>
    %14 = arith.addf %8, %13 : vector<2x16xf32>
    %15 = vector.extract_strided_slice %0 {offsets = [0, 2], sizes = [2, 1], strides = [1, 1]} : vector<2x5xf32> to vector<2x1xf32>
    %c2 = arith.constant 2 : index
    %c0_6 = arith.constant 0 : index
    %16 = vector.load %arg3[%c2, %c0_6] : memref<5x16xf32, #tpu.memory_space<vmem>>, vector<1x16xf32>
    %17 = vector.broadcast %15 : vector<2x1xf32> to vector<2x16xf32>
    %18 = vector.broadcast %16 : vector<1x16xf32> to vector<2x16xf32>
    %19 = arith.mulf %17, %18 : vector<2x16xf32>
    %20 = arith.addf %14, %19 : vector<2x16xf32>
    %21 = vector.extract_strided_slice %0 {offsets = [0, 3], sizes = [2, 1], strides = [1, 1]} : vector<2x5xf32> to vector<2x1xf32>
    %c3 = arith.constant 3 : index
    %c0_7 = arith.constant 0 : index
    %22 = vector.load %arg3[%c3, %c0_7] : memref<5x16xf32, #tpu.memory_space<vmem>>, vector<1x16xf32>
    %23 = vector.broadcast %21 : vector<2x1xf32> to vector<2x16xf32>
    %24 = vector.broadcast %22 : vector<1x16xf32> to vector<2x16xf32>
    %25 = arith.mulf %23, %24 : vector<2x16xf32>
    %26 = arith.addf %20, %25 : vector<2x16xf32>
    %27 = vector.extract_strided_slice %0 {offsets = [0, 4], sizes = [2, 1], strides = [1, 1]} : vector<2x5xf32> to vector<2x1xf32>
    %c4 = arith.constant 4 : index
    %c0_8 = arith.constant 0 : index
    %28 = vector.load %arg3[%c4, %c0_8] : memref<5x16xf32, #tpu.memory_space<vmem>>, vector<1x16xf32>
    %29 = vector.broadcast %27 : vector<2x1xf32> to vector<2x16xf32>
    %30 = vector.broadcast %28 : vector<1x16xf32> to vector<2x16xf32>
    %31 = arith.mulf %29, %30 : vector<2x16xf32>
    %32 = arith.addf %26, %31 : vector<2x16xf32>
    %cst = arith.constant 0.000000e+00 : f32
    %33 = vector.broadcast %cst : f32 to vector<2x16xf32>
    %34 = arith.maximumf %32, %33 : vector<2x16xf32>
    %c0_9 = arith.constant 0 : index
    %c0_10 = arith.constant 0 : index
    %35 = vector.load %arg5[%c0_9, %c0_10] : memref<16x32xf32, #tpu.memory_space<vmem>>, vector<16x32xf32>
    %cst_11 = arith.constant dense<0.000000e+00> : vector<2x32xf32>
    %36 = tpu.matmul %34, %35, %cst_11 {dimension_numbers = #tpu.dot_dimension_numbers<[1], [0], [0], [1], [0, 0, 1, 1], [], []>} : vector<2x16xf32>, vector<16x32xf32>, vector<2x32xf32> -> vector<2x32xf32>
    %c0_12 = arith.constant 0 : index
    %c0_13 = arith.constant 0 : index
    %37 = vector.load %arg6[%c0_12, %c0_13] : memref<1x32xf32, #tpu.memory_space<vmem>>, vector<1x32xf32>
    %38 = vector.broadcast %37 : vector<1x32xf32> to vector<2x32xf32>
    %39 = arith.addf %36, %38 : vector<2x32xf32>
    %cst_14 = arith.constant 0.000000e+00 : f32
    %40 = vector.broadcast %cst_14 : f32 to vector<2x32xf32>
    %41 = arith.maximumf %39, %40 : vector<2x32xf32>
    %cst_15 = arith.constant dense<0.000000e+00> : vector<2xf32>
    %42 = vector.multi_reduction <add>, %41, %cst_15 [1] : vector<2x32xf32> to vector<2xf32>
    %43 = vector.shape_cast %42 : vector<2xf32> to vector<2x1xf32>
    %cst_16 = arith.constant 3.200000e+01 : f32
    %44 = vector.broadcast %cst_16 : f32 to vector<2x1xf32>
    %45 = arith.divf %43, %44 : vector<2x1xf32>
    %46 = vector.broadcast %45 : vector<2x1xf32> to vector<2x32xf32>
    %47 = arith.subf %41, %46 : vector<2x32xf32>
    %48 = arith.mulf %47, %47 : vector<2x32xf32>
    %cst_17 = arith.constant dense<0.000000e+00> : vector<2xf32>
    %49 = vector.multi_reduction <add>, %48, %cst_17 [1] : vector<2x32xf32> to vector<2xf32>
    %50 = vector.shape_cast %49 : vector<2xf32> to vector<2x1xf32>
    %cst_18 = arith.constant 3.200000e+01 : f32
    %51 = vector.broadcast %cst_18 : f32 to vector<2x1xf32>
    %52 = arith.divf %50, %51 : vector<2x1xf32>
    %53 = vector.broadcast %45 : vector<2x1xf32> to vector<2x32xf32>
    %54 = arith.subf %41, %53 : vector<2x32xf32>
    %cst_19 = arith.constant 9.99999974E-6 : f32
    %55 = vector.broadcast %cst_19 : f32 to vector<2x1xf32>
    %56 = arith.addf %52, %55 : vector<2x1xf32>
    %57 = math.rsqrt %56 : vector<2x1xf32>
    %58 = vector.broadcast %57 : vector<2x1xf32> to vector<2x32xf32>
    %59 = arith.mulf %54, %58 : vector<2x32xf32>
    %c0_20 = arith.constant 0 : index
    %c0_21 = arith.constant 0 : index
    %60 = vector.load %arg7[%c0_20, %c0_21] : memref<1x32xf32, #tpu.memory_space<vmem>>, vector<1x32xf32>
    %61 = vector.broadcast %60 : vector<1x32xf32> to vector<2x32xf32>
    %62 = arith.mulf %59, %61 : vector<2x32xf32>
    %c0_22 = arith.constant 0 : index
    %c0_23 = arith.constant 0 : index
    %63 = vector.load %arg8[%c0_22, %c0_23] : memref<1x32xf32, #tpu.memory_space<vmem>>, vector<1x32xf32>
    %64 = vector.broadcast %63 : vector<1x32xf32> to vector<2x32xf32>
    %65 = arith.addf %62, %64 : vector<2x32xf32>
    %c0_24 = arith.constant 0 : index
    %c0_25 = arith.constant 0 : index
    %66 = vector.load %arg1[%c0_24, %c0_25] : memref<256x32xf32, #tpu.memory_space<vmem>>, vector<256x32xf32>
    %67 = vector.shape_cast %66 : vector<256x32xf32> to vector<1x256x32xf32>
    %68 = vector.shape_cast %65 : vector<2x32xf32> to vector<2x1x32xf32>
    %69 = vector.broadcast %67 : vector<1x256x32xf32> to vector<2x256x32xf32>
    %70 = vector.broadcast %68 : vector<2x1x32xf32> to vector<2x256x32xf32>
    %71 = arith.addf %69, %70 : vector<2x256x32xf32>
    %c0_26 = arith.constant 0 : index
    %c0_27 = arith.constant 0 : index
    %c0_28 = arith.constant 0 : index
    %72 = vector.load %arg9[%c0_26, %c0_27, %c0_28] : memref<2x256x32xf32, #tpu.memory_space<vmem>>, vector<2x256x32xf32>
    tpu.vector_store %arg9[%c0_26, %c0_27, %c0_28], %71 {strides = array<i32>} : memref<2x256x32xf32, #tpu.memory_space<vmem>>, vector<2x256x32xf32>,
    return
  }
  func.func @transform_0(%arg0: i32) -> (i32, i32) {
    %c0_i32 = arith.constant 0 : i32
    %c0_i32_0 = arith.constant 0 : i32
    return %arg0, %c0_i32 : i32, i32
  }
  func.func @transform_1(%arg0: i32) -> (i32, i32) {
    %c0_i32 = arith.constant 0 : i32
    %c0_i32_0 = arith.constant 0 : i32
    %c0_i32_1 = arith.constant 0 : i32
    return %c0_i32, %c0_i32_0 : i32, i32
  }
  func.func @transform_2(%arg0: i32) -> (i32, i32) {
    %c0_i32 = arith.constant 0 : i32
    %c0_i32_0 = arith.constant 0 : i32
    %c0_i32_1 = arith.constant 0 : i32
    return %c0_i32, %c0_i32_0 : i32, i32
  }
  func.func @transform_3(%arg0: i32) -> (i32, i32) {
    %c0_i32 = arith.constant 0 : i32
    %c0_i32_0 = arith.constant 0 : i32
    %c0_i32_1 = arith.constant 0 : i32
    return %c0_i32, %c0_i32_0 : i32, i32
  }
  func.func @transform_4(%arg0: i32) -> (i32, i32) {
    %c0_i32 = arith.constant 0 : i32
    %c0_i32_0 = arith.constant 0 : i32
    %c0_i32_1 = arith.constant 0 : i32
    return %c0_i32, %c0_i32_0 : i32, i32
  }
  func.func @transform_5(%arg0: i32) -> (i32, i32) {
    %c0_i32 = arith.constant 0 : i32
    %c0_i32_0 = arith.constant 0 : i32
    %c0_i32_1 = arith.constant 0 : i32
    return %c0_i32, %c0_i32_0 : i32, i32
  }
  func.func @transform_6(%arg0: i32) -> (i32, i32) {
    %c0_i32 = arith.constant 0 : i32
    %c0_i32_0 = arith.constant 0 : i32
    %c0_i32_1 = arith.constant 0 : i32
    return %c0_i32, %c0_i32_0 : i32, i32
  }
  func.func @transform_7(%arg0: i32) -> (i32, i32) {
    %c0_i32 = arith.constant 0 : i32
    %c0_i32_0 = arith.constant 0 : i32
    %c0_i32_1 = arith.constant 0 : i32
    return %c0_i32, %c0_i32_0 : i32, i32
  }
  func.func @transform_8(%arg0: i32) -> (i32, i32, i32) {
    %c0_i32 = arith.constant 0 : i32
    %c0_i32_0 = arith.constant 0 : i32
    %c0_i32_1 = arith.constant 0 : i32
    return %c0_i32, %arg0, %c0_i32_0 : i32, i32, i32
  }
}

</mosaic_0001>

<bundles_post_ra>
// kernel: tpu_custom_call.1
= control target key start
LH: loop header
LB: loop body
LE: loop exit
PB: predicated region body
PF: predicated region fallthrough
CT: control target
= control target key end

     0   :  { %v447_v0 = vmov 0   ;;  %v448_v1 = vmov 2   ;;  %v449_v3 = vmov 1   ;;  %v450_v4 = vmov 3   ;;  %s1085_s1 = inlined_call_operand.vmem [shape: f32[2,5], index: 1, kind: input, shape index: {}]   ;;  %s1086_s4 = inlined_call_operand.vmem [shape: f32[16,32], index: 4, kind: input, shape index: {}]   ;;  %s1087_s2 = inlined_call_operand.vmem [shape: f32[5,16], index: 2, kind: input, shape index: {}]   ;;  %s1088_s3 = inlined_call_operand.vmem [shape: f32[1,16], index: 3, kind: input, shape index: {}]   ;;  %s1089_s5 = inlined_call_operand.vmem [shape: f32[1,32], index: 5, kind: input, shape index: {}]   ;;  %s1090_s6 = inlined_call_operand.vmem [shape: f32[1,32], index: 6, kind: input, shape index: {}]   ;;  %s1091_s7 = inlined_call_operand.vmem [shape: f32[1,32], index: 7, kind: input, shape index: {}]   ;;  %s1092_s0 = inlined_call_operand.vmem [shape: f32[256,32], index: 0, kind: input, shape index: {}]   ;;  %s1093_s8 = inlined_call_operand.vmem [shape: f32[2,256,32], index: 8, kind: output, shape index: {}]  }
   0x1   :  { %439 = vset.pattern.permute.xlu0 %v447_v0  ;;  %441 = vset.pattern.permute.xlu1 %v448_v1  ;;  %v29_v2 = vld [vmem:[%s1085_s1] sm:$0x3]  ;;  %v451_v5 = vmov 4   ;;  %v95_v7 = vld [vmem:[%s1086_s4 + $0x8] sm:$0xff]  ;;  %v452_v9 = vmov 0.0|0.0   ;;  %vm453_vm0 = vmmov 0   ;;  %v245_v49 = vlaneseq }
   0x2   :  { %34 = vperm.xlu0 %439, %v29_v2   ;;  %62 = vperm.xlu1 %441, %v29_v2   ;;  %v94_v6 = vld [vmem:[%s1086_s4] sm:$0xff]  ;;  %v454_v10 = vmov 0.0   ;;  %vm103_vm1 = vcmask 130048   ;;  %vm178_vm2 = vcmask 254976   ;;  %v455_v47 = vmov 1966171168  }
   0x3   :  { %v428_v8 = vpack.c.bf16 %v95_v7, %v94_v6  ;;  %427 = vmatprep.subr.bf16.mxu0 %v452_v9  ;;  %424 = vmatprep.mubr.msk.f32.mxu0 %vm453_vm0, %v454_v10  ;;  %v407_v11 = vld [vmem:[%s1087_s2] ss:$0 sm:$0xff]  ;;  %v409_v16 = vld [vmem:[%s1087_s2 + $0x1] ss:$0 sm:$0xff]  ;;  %v410_v17 = vld [vmem:[%s1087_s2 + $0x2] ss:$0 sm:$0xff]  ;;  %v243_v48 = vunpack.c.l.s4 %v455_v47 }
   0x4   :  { %v408_v15 = vld [vmem:[%s1088_s3] ss:$0 sm:$0xff]  ;;  %v411_v22 = vld [vmem:[%s1087_s2 + $0x3] ss:$0 sm:$0xff]  ;;  %v412_v25 = vld [vmem:[%s1087_s2 + $0x4] ss:$0 sm:$0xff] }
   0x5   :  { %429 = vmatpush3.bf16.msra.mxu0 %v428_v8  ;;  %v413_v33 = vld [vmem:[%s1089_s5] ss:$0 sm:$0xff]  ;;  %v244_v50 = vunpack.c.0.s8 %v243_v48  ;;  %v246_v51 = vshrl.u32 %v245_v49, 7  ;;  %v545_v62 = vld [vmem:[%s1092_s0 + $0x8] sm:$0xff]  ;;  %v550_v63 = vld [vmem:[%s1092_s0 + $0x10] sm:$0xff]  ;;  %vm338_vm3 = vcmask 261120  }
   0x6   :  { %440 = vset.pattern.permute.xlu0 %v449_v3  ;;  %442 = vset.pattern.permute.xlu1 %v450_v4  ;;  %v415_v53 = vld [vmem:[%s1090_s6] ss:$0 sm:$0xff]  ;;  %v555_v0 = vld [vmem:[%s1092_s0 + $0x18] sm:$0xff]  ;;  %v570_v3 = vld [vmem:[%s1092_s0 + $0x30] sm:$0xff] }
   0x7   :  { %51 = vperm.xlu0 %440, %v29_v2   ;;  %73 = vperm.xlu1 %442, %v29_v2   ;;  %v416_v55 = vld [vmem:[%s1091_s7] ss:$0 sm:$0xff]  ;;  %v247_v56 = vsub.s32 %v244_v50, %v246_v51  ;;  %v266_v59 = vsub.s32 0, %v246_v51  ;;  %v575_v6 = vld [vmem:[%s1092_s0 + $0x38] sm:$0xff]  ;;  %v585_v8 = vld [vmem:[%s1092_s0 + $0x48] sm:$0xff] }
   0x8   :  { %v540_v61 = vld [vmem:[%s1092_s0] sm:$0xff]  ;;  %v590_v9 = vld [vmem:[%s1092_s0 + $0x50] sm:$0xff]  ;;  %v595_v10 = vld [vmem:[%s1092_s0 + $0x58] sm:$0xff] }
   0x9   :  { %v560_v1 = vld [vmem:[%s1092_s0 + $0x20] sm:$0xff]  ;;  %v752_v47 = vld [vmem:[%s1092_s0 + $0xf0] sm:$0xff] }
   0xa   :  { %v580_v7 = vld [vmem:[%s1092_s0 + $0x40] sm:$0xff] }
   0xb   :  { %443 = vset.pattern.permute.xlu1 %v451_v5  ;;  %444 = vset.pattern.permute.xlu0 %v451_v5 }
   0xc   :  { %84 = vperm.xlu1 %443, %v29_v2   ;;  %v565_v2 = vld [vmem:[%s1092_s0 + $0x28] sm:$0xff] }
  0x81   :  { %v35_v12 = vpop.permute.xlu0 %34  ;;  %v63_v13 = vpop.permute.xlu1 %62 }
  0x82   :  { %v41_v14 = vmul.f32 %v407_v11, %v35_v12  ;;  %v69_v23 = vmul.f32 %v410_v17, %v63_v13  ;;  %v600_v11 = vld [vmem:[%s1092_s0 + $0x60] sm:$0xff] }
  0x83   :  { %v622_v17 = vld [vmem:[%s1092_s0 + $0x80] sm:$0xff] }
  0x84   :  { %v48_v20 = vadd.f32 %v408_v15, %v41_v14  ;;  %v607_v14 = vld [vmem:[%s1092_s0 + $0x68] sm:$0xff]  ;;  %v612_v15 = vld [vmem:[%s1092_s0 + $0x70] sm:$0xff] }
  0x86   :  { %v52_v18 = vpop.permute.xlu0 %51  ;;  %v74_v19 = vpop.permute.xlu1 %73 }
  0x87   :  { %v58_v21 = vmul.f32 %v409_v16, %v52_v18  ;;  %v80_v27 = vmul.f32 %v411_v22, %v74_v19  ;;  %v617_v16 = vld [vmem:[%s1092_s0 + $0x78] sm:$0xff]  ;;  %v627_v18 = vld [vmem:[%s1092_s0 + $0x88] sm:$0xff]  ;;  %v632_v19 = vld [vmem:[%s1092_s0 + $0x90] sm:$0xff] }
  0x89   :  { %v59_v24 = vadd.f32 %v58_v21, %v48_v20 }
  0x8b   :  { %v70_v26 = vadd.f32 %v69_v23, %v59_v24  ;;  %v85_v28 = vpop.permute.xlu1 %84  ;;  %v645_v24 = vld [vmem:[%s1092_s0 + $0x98] sm:$0xff] }
  0x8c   :  { %v91_v29 = vmul.f32 %v412_v25, %v85_v28  ;;  %v650_v25 = vld [vmem:[%s1092_s0 + $0xa0] sm:$0xff] }
  0x8d   :  { %v81_v30 = vadd.f32 %v80_v27, %v70_v26  ;;  %v655_v26 = vld [vmem:[%s1092_s0 + $0xa8] sm:$0xff] }
  0x8f   :  { %v92_v31 = vadd.f32 %v91_v29, %v81_v30 }
  0x91   :  { %v93_v32 = vmax.f32 %v92_v31, 0.0  ;;  %v668_v31 = vld [vmem:[%s1092_s0 + $0xb0] sm:$0xff] }
  0x93   :  { %425 = vmatmul.mubr.msk.f32.vlgmr.msra.gmra.mrb[0].mxu0 %vm103_vm1, %v93_v32  ;;  %v673_v32 = vld [vmem:[%s1092_s0 + $0xb8] sm:$0xff] }
 0x166   :  { %v173_v34 = vpop.f32.mrb[0].mxu0 }
 0x167   :  { %v174_v35 = vadd.f32 %v413_v33, %v173_v34  ;;  %v426_v36 = vpop.f32.mrb[1].mxu0  ;;  %v678_v33 = vld [vmem:[%s1092_s0 + $0xc0] sm:$0xff] }
 0x169   :  { %v177_v37 = vmax.f32 %v174_v35, 0.0 }
 0x16b   :  { %v179_v38 = vsel %vm178_vm2, %v177_v37, 0.0 }
 0x16c   :  { %180 = vadd.xlane.f32.xlu0 %v179_v38  ;;  %v703_v38 = vld [vmem:[%s1092_s0 + $0xc8] sm:$0xff] }
 0x1f9   :  { %v181_v39 = vpop.xlane.xlu0 %180 }
 0x1fa   :  { %v183_v40 = vmul.f32 0.03125, %v181_v39  ;;  %v708_v39 = vld [vmem:[%s1092_s0 + $0xd0] sm:$0xff] }
 0x1fc   :  { %v184_v41 = vsub.f32 %v177_v37, %v183_v40  ;;  %v713_v40 = vld [vmem:[%s1092_s0 + $0xd8] sm:$0xff] }
 0x1fe   :  { %v185_v42 = vmul.f32 %v184_v41, %v184_v41 }
 0x200   :  { %v186_v43 = vsel %vm178_vm2, %v185_v42, 0.0 }
 0x201   :  { %187 = vadd.xlane.f32.xlu1 %v186_v43 }
 0x28e   :  { %v188_v44 = vpop.xlane.xlu1 %187 }
 0x28f   :  { %v189_v45 = vmul.f32 0.03125, %v188_v44 }
 0x291   :  { %v190_v46 = vadd.f32 1e-05, %v189_v45  ;;  %v742_v45 = vld [vmem:[%s1092_s0 + $0xe0] sm:$0xff] }
 0x293   :  { %445 = vrsqrt.f32 %v190_v46  ;;  %v747_v46 = vld [vmem:[%s1092_s0 + $0xe8] sm:$0xff] }
 0x29d   :  { %v446_v52 = vpop.eup %445 }
 0x29e   :  { %v192_v54 = vmul.f32 %v446_v52, %v184_v41  ;;  %v781_v52 = vld [vmem:[%s1092_s0 + $0xf8] sm:$0xff] }
 0x2a0   :  { %v200_v57 = vmul.f32 %v415_v53, %v192_v54 }
 0x2a2   :  { %v208_v58 = vadd.f32 %v416_v55, %v200_v57 }
 0x2a4   :  { %v248_v60 = vrot.slane %v208_v58, %v247_v56 }
 0x2a6   :  { %v249_v4 = vcombine.high %v248_v60, %v248_v60  ;;  %v256_v5 = vrot.slane %v248_v60, %v247_v56 }
 0x2a8   :  { %v263_v12 = vrot.slane %v249_v4, %v247_v56  ;;  %v602_v13 = vrot.slane %v256_v5, %v266_v59 }
 0x2aa   :  { %v634_v20 = vrot.slane %v263_v12, %v266_v59  ;;  %v274_v21 = vadd.f32 %v602_v13, %v540_v61  ;;  %v275_v22 = vadd.f32 %v602_v13, %v545_v62  ;;  %v276_v23 = vadd.f32 %v602_v13, %v550_v63 }
 0x2ab   :  { %v277_v27 = vadd.f32 %v602_v13, %v555_v0  ;;  %v278_v28 = vadd.f32 %v602_v13, %v560_v1  ;;  %v279_v29 = vadd.f32 %v602_v13, %v565_v2  ;;  %v280_v30 = vadd.f32 %v602_v13, %v570_v3 }
 0x2ac   :  { %v281_v34 = vadd.f32 %v602_v13, %v575_v6  ;;  %v282_v35 = vadd.f32 %v602_v13, %v580_v7  ;;  %v283_v36 = vadd.f32 %v602_v13, %v585_v8  ;;  %v284_v37 = vadd.f32 %v602_v13, %v590_v9  ;;  %339 = vst.msk [vmem:[%s1093_s8] sm:$0xff] %vm338_vm3, %v274_v21 }
 0x2ad   :  { %340 = vst.msk [vmem:[%s1093_s8 + $0x8] sm:$0xff] %vm338_vm3, %v275_v22  ;;  %341 = vst.msk [vmem:[%s1093_s8 + $0x10] sm:$0xff] %vm338_vm3, %v276_v23  ;;  %v285_v41 = vadd.f32 %v602_v13, %v595_v10  ;;  %v286_v42 = vadd.f32 %v602_v13, %v600_v11  ;;  %v287_v43 = vadd.f32 %v602_v13, %v607_v14 }
 0x2ae   :  { %v288_v44 = vadd.f32 %v602_v13, %v612_v15  ;;  %342 = vst.msk [vmem:[%s1093_s8 + $0x18] sm:$0xff] %vm338_vm3, %v277_v27  ;;  %343 = vst.msk [vmem:[%s1093_s8 + $0x20] sm:$0xff] %vm338_vm3, %v278_v28  ;;  %v289_v48 = vadd.f32 %v602_v13, %v617_v16  ;;  %v290_v49 = vadd.f32 %v602_v13, %v622_v17 }
 0x2af   :  { %344 = vst.msk [vmem:[%s1093_s8 + $0x28] sm:$0xff] %vm338_vm3, %v279_v29  ;;  %345 = vst.msk [vmem:[%s1093_s8 + $0x30] sm:$0xff] %vm338_vm3, %v280_v30  ;;  %v291_v50 = vadd.f32 %v602_v13, %v627_v18  ;;  %v292_v51 = vadd.f32 %v602_v13, %v632_v19  ;;  %v293_v53 = vadd.f32 %v602_v13, %v645_v24 }
 0x2b0   :  { %346 = vst.msk [vmem:[%s1093_s8 + $0x38] sm:$0xff] %vm338_vm3, %v281_v34  ;;  %347 = vst.msk [vmem:[%s1093_s8 + $0x40] sm:$0xff] %vm338_vm3, %v282_v35  ;;  %v294_v54 = vadd.f32 %v602_v13, %v650_v25  ;;  %v295_v55 = vadd.f32 %v602_v13, %v655_v26  ;;  %v296_v56 = vadd.f32 %v602_v13, %v668_v31 }
 0x2b1   :  { %348 = vst.msk [vmem:[%s1093_s8 + $0x48] sm:$0xff] %vm338_vm3, %v283_v36  ;;  %349 = vst.msk [vmem:[%s1093_s8 + $0x50] sm:$0xff] %vm338_vm3, %v284_v37  ;;  %v297_v57 = vadd.f32 %v602_v13, %v673_v32  ;;  %v298_v58 = vadd.f32 %v602_v13, %v678_v33  ;;  %v299_v59 = vadd.f32 %v602_v13, %v703_v38 }
 0x2b2   :  { %350 = vst.msk [vmem:[%s1093_s8 + $0x58] sm:$0xff] %vm338_vm3, %v285_v41  ;;  %351 = vst.msk [vmem:[%s1093_s8 + $0x60] sm:$0xff] %vm338_vm3, %v286_v42  ;;  %v300_v60 = vadd.f32 %v602_v13, %v708_v39  ;;  %v301_v4 = vadd.f32 %v602_v13, %v713_v40  ;;  %v302_v5 = vadd.f32 %v602_v13, %v742_v45 }
 0x2b3   :  { %352 = vst.msk [vmem:[%s1093_s8 + $0x68] sm:$0xff] %vm338_vm3, %v287_v43  ;;  %353 = vst.msk [vmem:[%s1093_s8 + $0x70] sm:$0xff] %vm338_vm3, %v288_v44  ;;  %v303_v12 = vadd.f32 %v602_v13, %v747_v46  ;;  %v304_v21 = vadd.f32 %v602_v13, %v752_v47  ;;  %v305_v22 = vadd.f32 %v602_v13, %v781_v52 }
 0x2b4   :  { %354 = vst.msk [vmem:[%s1093_s8 + $0x78] sm:$0xff] %vm338_vm3, %v289_v48  ;;  %355 = vst.msk [vmem:[%s1093_s8 + $0x80] sm:$0xff] %vm338_vm3, %v290_v49  ;;  %v306_v23 = vadd.f32 %v634_v20, %v540_v61  ;;  %v307_v27 = vadd.f32 %v634_v20, %v545_v62  ;;  %v308_v28 = vadd.f32 %v634_v20, %v550_v63 }
 0x2b5   :  { %356 = vst.msk [vmem:[%s1093_s8 + $0x88] sm:$0xff] %vm338_vm3, %v291_v50  ;;  %357 = vst.msk [vmem:[%s1093_s8 + $0x90] sm:$0xff] %vm338_vm3, %v292_v51  ;;  %v309_v61 = vadd.f32 %v634_v20, %v555_v0  ;;  %v310_v62 = vadd.f32 %v634_v20, %v560_v1  ;;  %v311_v63 = vadd.f32 %v634_v20, %v565_v2 }
 0x2b6   :  { %358 = vst.msk [vmem:[%s1093_s8 + $0x98] sm:$0xff] %vm338_vm3, %v293_v53  ;;  %359 = vst.msk [vmem:[%s1093_s8 + $0xa0] sm:$0xff] %vm338_vm3, %v294_v54  ;;  %v312_v13 = vadd.f32 %v634_v20, %v570_v3  ;;  %v313_v0 = vadd.f32 %v634_v20, %v575_v6  ;;  %v314_v1 = vadd.f32 %v634_v20, %v580_v7 }
 0x2b7   :  { %360 = vst.msk [vmem:[%s1093_s8 + $0xa8] sm:$0xff] %vm338_vm3, %v295_v55  ;;  %361 = vst.msk [vmem:[%s1093_s8 + $0xb0] sm:$0xff] %vm338_vm3, %v296_v56  ;;  %v315_v2 = vadd.f32 %v634_v20, %v585_v8  ;;  %v316_v3 = vadd.f32 %v634_v20, %v590_v9  ;;  %v317_v6 = vadd.f32 %v634_v20, %v595_v10 }
 0x2b8   :  { %362 = vst.msk [vmem:[%s1093_s8 + $0xb8] sm:$0xff] %vm338_vm3, %v297_v57  ;;  %363 = vst.msk [vmem:[%s1093_s8 + $0xc0] sm:$0xff] %vm338_vm3, %v298_v58  ;;  %v318_v7 = vadd.f32 %v634_v20, %v600_v11  ;;  %v319_v8 = vadd.f32 %v634_v20, %v607_v14  ;;  %v320_v9 = vadd.f32 %v634_v20, %v612_v15 }
 0x2b9   :  { %364 = vst.msk [vmem:[%s1093_s8 + $0xc8] sm:$0xff] %vm338_vm3, %v299_v59  ;;  %365 = vst.msk [vmem:[%s1093_s8 + $0xd0] sm:$0xff] %vm338_vm3, %v300_v60  ;;  %v321_v10 = vadd.f32 %v634_v20, %v617_v16  ;;  %v322_v11 = vadd.f32 %v634_v20, %v622_v17  ;;  %v323_v14 = vadd.f32 %v634_v20, %v627_v18 }
 0x2ba   :  { %366 = vst.msk [vmem:[%s1093_s8 + $0xd8] sm:$0xff] %vm338_vm3, %v301_v4  ;;  %367 = vst.msk [vmem:[%s1093_s8 + $0xe0] sm:$0xff] %vm338_vm3, %v302_v5  ;;  %v324_v15 = vadd.f32 %v634_v20, %v632_v19  ;;  %v325_v16 = vadd.f32 %v634_v20, %v645_v24  ;;  %v326_v17 = vadd.f32 %v634_v20, %v650_v25 }
 0x2bb   :  { %368 = vst.msk [vmem:[%s1093_s8 + $0xe8] sm:$0xff] %vm338_vm3, %v303_v12  ;;  %369 = vst.msk [vmem:[%s1093_s8 + $0xf0] sm:$0xff] %vm338_vm3, %v304_v21  ;;  %v327_v18 = vadd.f32 %v634_v20, %v655_v26  ;;  %v328_v19 = vadd.f32 %v634_v20, %v668_v31  ;;  %v329_v24 = vadd.f32 %v634_v20, %v673_v32 }
 0x2bc   :  { %370 = vst.msk [vmem:[%s1093_s8 + $0xf8] sm:$0xff] %vm338_vm3, %v305_v22  ;;  %371 = vst.msk [vmem:[%s1093_s8 + $0x100] sm:$0xff] %vm338_vm3, %v306_v23  ;;  %v330_v25 = vadd.f32 %v634_v20, %v678_v33  ;;  %v331_v26 = vadd.f32 %v634_v20, %v703_v38  ;;  %v332_v29 = vadd.f32 %v634_v20, %v708_v39 }
 0x2bd   :  { %372 = vst.msk [vmem:[%s1093_s8 + $0x108] sm:$0xff] %vm338_vm3, %v307_v27  ;;  %373 = vst.msk [vmem:[%s1093_s8 + $0x110] sm:$0xff] %vm338_vm3, %v308_v28  ;;  %v333_v30 = vadd.f32 %v634_v20, %v713_v40  ;;  %v334_v31 = vadd.f32 %v634_v20, %v742_v45  ;;  %v335_v32 = vadd.f32 %v634_v20, %v747_v46 }
 0x2be   :  { %374 = vst.msk [vmem:[%s1093_s8 + $0x118] sm:$0xff] %vm338_vm3, %v309_v61  ;;  %375 = vst.msk [vmem:[%s1093_s8 + $0x120] sm:$0xff] %vm338_vm3, %v310_v62  ;;  %v336_v33 = vadd.f32 %v634_v20, %v752_v47  ;;  %v337_v34 = vadd.f32 %v634_v20, %v781_v52 }
 0x2bf   :  { %376 = vst.msk [vmem:[%s1093_s8 + $0x128] sm:$0xff] %vm338_vm3, %v311_v63  ;;  %377 = vst.msk [vmem:[%s1093_s8 + $0x130] sm:$0xff] %vm338_vm3, %v312_v13 }
 0x2c0   :  { %378 = vst.msk [vmem:[%s1093_s8 + $0x138] sm:$0xff] %vm338_vm3, %v313_v0  ;;  %379 = vst.msk [vmem:[%s1093_s8 + $0x140] sm:$0xff] %vm338_vm3, %v314_v1 }
 0x2c1   :  { %380 = vst.msk [vmem:[%s1093_s8 + $0x148] sm:$0xff] %vm338_vm3, %v315_v2  ;;  %381 = vst.msk [vmem:[%s1093_s8 + $0x150] sm:$0xff] %vm338_vm3, %v316_v3 }
 0x2c2   :  { %382 = vst.msk [vmem:[%s1093_s8 + $0x158] sm:$0xff] %vm338_vm3, %v317_v6  ;;  %383 = vst.msk [vmem:[%s1093_s8 + $0x160] sm:$0xff] %vm338_vm3, %v318_v7 }
 0x2c3   :  { %384 = vst.msk [vmem:[%s1093_s8 + $0x168] sm:$0xff] %vm338_vm3, %v319_v8  ;;  %385 = vst.msk [vmem:[%s1093_s8 + $0x170] sm:$0xff] %vm338_vm3, %v320_v9 }
 0x2c4   :  { %386 = vst.msk [vmem:[%s1093_s8 + $0x178] sm:$0xff] %vm338_vm3, %v321_v10  ;;  %387 = vst.msk [vmem:[%s1093_s8 + $0x180] sm:$0xff] %vm338_vm3, %v322_v11 }
 0x2c5   :  { %388 = vst.msk [vmem:[%s1093_s8 + $0x188] sm:$0xff] %vm338_vm3, %v323_v14  ;;  %389 = vst.msk [vmem:[%s1093_s8 + $0x190] sm:$0xff] %vm338_vm3, %v324_v15 }
 0x2c6   :  { %390 = vst.msk [vmem:[%s1093_s8 + $0x198] sm:$0xff] %vm338_vm3, %v325_v16  ;;  %391 = vst.msk [vmem:[%s1093_s8 + $0x1a0] sm:$0xff] %vm338_vm3, %v326_v17 }
 0x2c7   :  { %392 = vst.msk [vmem:[%s1093_s8 + $0x1a8] sm:$0xff] %vm338_vm3, %v327_v18  ;;  %393 = vst.msk [vmem:[%s1093_s8 + $0x1b0] sm:$0xff] %vm338_vm3, %v328_v19 }
 0x2c8   :  { %394 = vst.msk [vmem:[%s1093_s8 + $0x1b8] sm:$0xff] %vm338_vm3, %v329_v24  ;;  %395 = vst.msk [vmem:[%s1093_s8 + $0x1c0] sm:$0xff] %vm338_vm3, %v330_v25 }
 0x2c9   :  { %396 = vst.msk [vmem:[%s1093_s8 + $0x1c8] sm:$0xff] %vm338_vm3, %v331_v26  ;;  %397 = vst.msk [vmem:[%s1093_s8 + $0x1d0] sm:$0xff] %vm338_vm3, %v332_v29 }
 0x2ca   :  { %398 = vst.msk [vmem:[%s1093_s8 + $0x1d8] sm:$0xff] %vm338_vm3, %v333_v30  ;;  %399 = vst.msk [vmem:[%s1093_s8 + $0x1e0] sm:$0xff] %vm338_vm3, %v334_v31 }
 0x2cb   :  { %400 = vst.msk [vmem:[%s1093_s8 + $0x1e8] sm:$0xff] %vm338_vm3, %v335_v32  ;;  %401 = vst.msk [vmem:[%s1093_s8 + $0x1f0] sm:$0xff] %vm338_vm3, %v336_v33 }
 0x2cc   :  { %402 = vst.msk [vmem:[%s1093_s8 + $0x1f8] sm:$0xff] %vm338_vm3, %v337_v34 }

</bundles_post_ra>
